<compile_context>
chip_gen: v5e
topology: v5e:2x2
jax: 0.10.0
libtpu: 0.0.40
codegen_flags: <defaults>
</compile_context>

<pallas_src>
import jax
import jax.numpy as jnp
from jax.experimental import pallas as pl
from jax.experimental.pallas import tpu as pltpu

_LANES = 128
_MAX_TILE_BYTES = 8 * 1024 * 1024       # per-block byte cap (v7x-friendly)
_SMALL_INPUT_ELEMS = 64 * 1024          # below this, plain XLA fusion wins


def _hsig_f32(x):
    # ReLU6(x + 3) / 6, computed in float32 (divide, not *1/6, for parity).
    xf = x.astype(jnp.float32)
    return jnp.minimum(jnp.maximum(xf + 3.0, 0.0), 6.0) / 6.0


def _h_sigmoid_kernel(x_ref, o_ref):
    o_ref[...] = _hsig_f32(x_ref[...]).astype(o_ref.dtype)


def _sublane(dtype) -> int:
    itemsize = jnp.dtype(dtype).itemsize
    if itemsize >= 4:
        return 8
    if itemsize == 2:
        return 16
    return 32


def _round_up(a: int, m: int) -> int:
    return ((a + m - 1) // m) * m


def _vmem_capacity_bytes() -> int:
    try:
        return int(pltpu.get_tpu_info().vmem_capacity_bytes)
    except Exception:
        return 64 * 1024 * 1024   # conservative fallback: v7x per-TC VMEM


def h_sigmoid(x: jax.Array, *, min_pallas_elems: int = _SMALL_INPUT_ELEMS) -> jax.Array:
    """Elementwise hard-sigmoid: relu6(x + 3) / 6, matching the PyTorch module."""
    orig_shape = x.shape
    dtype = x.dtype
    n = x.size

    # Small-input fast path: kernel launch + pipeline prologue dominates here.
    if n < max(min_pallas_elems, _LANES):
        return _hsig_f32(x).astype(dtype)

    flat = x.reshape(-1)
    rows = pl.cdiv(n, _LANES)
    padded_n = rows * _LANES
    if padded_n != n:
        # Pad only the <128-element tail into one extra lane-row; the prefix
        # slice of the kernel output below can fuse into the consumer
        # (no full-output jnp.concatenate, no prefix-slice copy of the input).
        flat = jnp.pad(flat, (0, padded_n - n))
    x2d = flat.reshape(rows, _LANES)

    sub = _sublane(dtype)
    itemsize = jnp.dtype(dtype).itemsize
    vmem = _vmem_capacity_bytes()
    tile_bytes = min(_MAX_TILE_BYTES, vmem // 8)
    target_rows = max(sub, tile_bytes // (_LANES * itemsize))

    # Grid sizing:
    #  * >= 2 steps whenever there is enough data so both v7x TCs get work,
    #  * rounded up to an EVEN step count for a balanced megacore split,
    #  * row tile a multiple of the native sublane packing,
    #  * if the (rounded) tile covers everything, use a full-extent block
    #    (always legal, no masking, single step).
    nsteps = pl.cdiv(rows, target_rows)
    if rows > 2 * sub:
        nsteps = max(nsteps, 2)
    if nsteps > 1:
        nsteps = 2 * pl.cdiv(nsteps, 2)
    tr = _round_up(pl.cdiv(rows, nsteps), sub)
    if tr >= rows:
        tr = rows
    grid = (pl.cdiv(rows, tr),)

    # 2 arrays x 2 pipeline buffers x tile_bytes (+ headroom), capped well
    # below physical VMEM on every generation (48 MiB with 8 MiB tiles).
    vmem_limit = min(3 * vmem // 4, 4 * tile_bytes + 16 * 1024 * 1024)

    out2d = pl.pallas_call(
        _h_sigmoid_kernel,
        out_shape=jax.ShapeDtypeStruct((rows, _LANES), dtype),
        grid_spec=pltpu.PrefetchScalarGridSpec(
            num_scalar_prefetch=0,
            grid=grid,
            in_specs=[pl.BlockSpec((tr, _LANES), lambda i: (i, 0))],
            out_specs=pl.BlockSpec((tr, _LANES), lambda i: (i, 0)),
        ),
        compiler_params=pltpu.CompilerParams(
            dimension_semantics=("parallel",),
            vmem_limit_bytes=vmem_limit,
        ),
        # Same shape/dtype/index_map on both sides: let the output reuse the
        # input HBM buffer (free when the input value is dead / donated).
        input_output_aliases={0: 0},
    )(x2d)

    out_flat = out2d.reshape(-1)
    if padded_n != n:
        out_flat = out_flat[:n]
    return out_flat.reshape(orig_shape)


if __name__ == "__main__":
    key = jax.random.PRNGKey(0)
    k1, k2, k3, k4 = jax.random.split(key, 4)

    def ref(x):
        return (jnp.clip(x.astype(jnp.float32) + 3.0, 0.0, 6.0) / 6.0).astype(x.dtype)

    # 1) Module-consistent small NCHW input (lane-aligned element count).
    #    Force the Pallas path (production default would route this tiny
    #    tensor through the XLA fast path).
    x = jax.random.normal(k1, (2, 4, 16, 16), dtype=jnp.float32) * 4.0
    y = jax.block_until_ready(h_sigmoid(x, min_pallas_elems=0))
    assert y.shape == x.shape and y.dtype == x.dtype
    assert jnp.allclose(y, ref(x), atol=1e-6), "mismatch vs reference (aligned case)"

    # 2) Ragged element count (n % 128 != 0): tail-row padding + prefix slice.
    x2 = jax.random.normal(k2, (2, 3, 13, 7), dtype=jnp.float32) * 4.0
    y2 = jax.block_until_ready(h_sigmoid(x2, min_pallas_elems=0))
    assert y2.shape == x2.shape and y2.dtype == x2.dtype
    assert jnp.allclose(y2, ref(x2), atol=1e-6), "mismatch vs reference (ragged case)"

    # 3) rows < sublane (128 <= n < 1024 for f32): full-extent (rows, 128) block.
    x3 = jax.random.normal(k3, (8, 25), dtype=jnp.float32) * 4.0
    y3 = jax.block_until_ready(h_sigmoid(x3, min_pallas_elems=0))
    assert y3.shape == x3.shape and y3.dtype == x3.dtype
    assert jnp.allclose(y3, ref(x3), atol=1e-6), "mismatch vs reference (short case)"

    # 4) bf16 input: kernel computes in f32 and casts on store.
    x4 = (jax.random.normal(k4, (4, 8, 64), dtype=jnp.float32) * 4.0).astype(jnp.bfloat16)
    y4 = jax.block_until_ready(h_sigmoid(x4, min_pallas_elems=0))
    assert y4.shape == x4.shape and y4.dtype == jnp.bfloat16
    assert jnp.allclose(y4.astype(jnp.float32), ref(x4).astype(jnp.float32),
                        atol=2e-2), "mismatch vs reference (bf16 case)"

    print("KERNEL_OK")
</pallas_src>

<mosaic_0001>
module attributes {stable_mosaic.version = 11 : i64} {
  func.func @_h_sigmoid_kernel(%arg0: i32, %arg1: memref<16x128xf32, #tpu.memory_space<vmem>>, %arg2: memref<16x128xf32, #tpu.memory_space<vmem>>) attributes {dimension_semantics = [#tpu.dimension_semantics<parallel>], iteration_bounds = array<i64: 1>, scalar_prefetch = 0 : i64, scratch_operands = 0 : i64, tpu.core_type = #tpu.core_type<tc>, window_params = [{transform_indices = @transform_0, window_bounds = array<i64: 16, 128>}, {transform_indices = @transform_1, window_bounds = array<i64: 16, 128>}]} {
    %c0 = arith.constant 0 : index
    %c0_0 = arith.constant 0 : index
    %0 = vector.load %arg1[%c0, %c0_0] : memref<16x128xf32, #tpu.memory_space<vmem>>, vector<16x128xf32>
    %cst = arith.constant 3.000000e+00 : f32
    %1 = vector.broadcast %cst : f32 to vector<16x128xf32>
    %2 = arith.addf %0, %1 : vector<16x128xf32>
    %cst_1 = arith.constant 0.000000e+00 : f32
    %3 = vector.broadcast %cst_1 : f32 to vector<16x128xf32>
    %4 = arith.maximumf %2, %3 : vector<16x128xf32>
    %cst_2 = arith.constant 6.000000e+00 : f32
    %5 = vector.broadcast %cst_2 : f32 to vector<16x128xf32>
    %6 = arith.minimumf %4, %5 : vector<16x128xf32>
    %cst_3 = arith.constant 6.000000e+00 : f32
    %7 = vector.broadcast %cst_3 : f32 to vector<16x128xf32>
    %8 = arith.divf %6, %7 : vector<16x128xf32>
    %c0_4 = arith.constant 0 : index
    %c0_5 = arith.constant 0 : index
    %9 = vector.load %arg2[%c0_4, %c0_5] : memref<16x128xf32, #tpu.memory_space<vmem>>, vector<16x128xf32>
    tpu.vector_store %arg2[%c0_4, %c0_5], %8 {strides = array<i32>} : memref<16x128xf32, #tpu.memory_space<vmem>>, vector<16x128xf32>,
    return
  }
  func.func @transform_0(%arg0: i32) -> (i32, i32) {
    %c0_i32 = arith.constant 0 : i32
    %c0_i32_0 = arith.constant 0 : i32
    return %arg0, %c0_i32 : i32, i32
  }
  func.func @transform_1(%arg0: i32) -> (i32, i32) {
    %c0_i32 = arith.constant 0 : i32
    %c0_i32_0 = arith.constant 0 : i32
    return %arg0, %c0_i32 : i32, i32
  }
}

</mosaic_0001>

<bundles_post_ra>
// kernel: tpu_custom_call.1
= control target key start
LH: loop header
LB: loop body
LE: loop exit
PB: predicated region body
PF: predicated region fallthrough
CT: control target
= control target key end

     0   :  { %6 = vsyncpa [#allocation3], 0  ;;  %s149_s0 = inlined_call_operand.hbm [shape: f32[16,128], index: 0, kind: input, shape index: {}, may-alias: {0,1}]   ;;  %s150_s1 = inlined_call_operand.hbm [shape: f32[16,128], index: 1, kind: output, shape index: {}, may-alias: {0,1}]  }
   0x1   :  { %7 = vsyncpa [#allocation4], 0  ;;  %s12_s8 = sshll.u32 %s149_s0, 4  ;;  %s122_s9 = smov [#allocation2]   ;;  %s13_s8 = int_to_ptr.hbm [resolvable:$true] %s12_s8 }
   0x2   :  { %s14_s10 = sshll.u32 %s122_s9, 4  ;;  %s123_s11 = smov 128   ;;  %s15_s10 = int_to_ptr.vmem [resolvable:$true] %s14_s10 }
   0x3   :  { %s124_s12 = smov 8  }
   0x4   :  { %20 = dma.hbm_to_vmem [thread:$0]  %s13_s8, 256, %s15_s10, [#allocation3], %s123_s11, %s123_s11, %s124_s12  }
   0x5   :  { %118 = dma.done.wait [#allocation3], 256  }
   0x6   :  { %119 = vsyncadd [#allocation3], 4294967040  ;;  %v125_v0 = vmov 6.0   ;;  %v25_v2 = vld [vmem:[#allocation2] sm:$0xff]  ;;  %v26_v3 = vld [vmem:[#allocation2 + $0x8] sm:$0xff]  ;;  %s126_s0 = smov [#allocation5]  }
   0x7   :  { %68 = vrcp.f32 %v125_v0  ;;  %v27_v4 = vadd.f32 3.0, %v25_v2  ;;  %v28_v6 = vadd.f32 3.0, %v26_v3  ;;  %s48_s13 = sshll.u32 %s126_s0, 4  ;;  %s50_s16 = sshll.u32 %s150_s1, 4  ;;  %s49_s13 = int_to_ptr.vmem [resolvable:$true] %s48_s13  ;;  %s51_s16 = int_to_ptr.hbm [resolvable:$true] %s50_s16 }
   0x9   :  { %v29_v7 = vmax.f32 %v27_v4, 0.0  ;;  %v30_v9 = vmax.f32 %v28_v6, 0.0 }
   0xb   :  { %v31_v11 = vmin.f32 %v29_v7, 6.0  ;;  %v32_v12 = vmin.f32 %v30_v9, 6.0 }
   0xd   :  { %v69_v1 = vpop.eup %68 }
   0xe   :  { %v34_v5 = vmul.f32 6.0, %v69_v1  ;;  %vm38_vm0 = vweird.f32 %v69_v1 }
  0x10   :  { %v35_v8 = vsub.f32 1.0, %v34_v5 }
  0x12   :  { %v36_v10 = vmul.f32 %v69_v1, %v35_v8 }
  0x14   :  { %v37_v13 = vadd.f32 %v69_v1, %v36_v10 }
  0x16   :  { %v39_v14 = vsel %vm38_vm0, %v69_v1, %v37_v13 }
  0x17   :  { %v40_v15 = vmul.f32 %v39_v14, %v31_v11  ;;  %v41_v16 = vmul.f32 %v39_v14, %v32_v12 }
  0x19   :  { %42 = vst [vmem:[#allocation5] sm:$0xff] %v40_v15 }
  0x1a   :  { %43 = vst [vmem:[#allocation5 + $0x8] sm:$0xff] %v41_v16 }
  0x1b   :  { %56 = dma.vmem_to_hbm [thread:$0]  %s49_s13, 256, %s51_s16, [#allocation4], %s123_s11, %s123_s11, %s124_s12  }
  0x1c   :  { %120 = dma.done.wait [#allocation4], 256  }
  0x1d   :  { %121 = vsyncadd [#allocation4], 4294967040 }
  0x1e   :  { %61 = vsyncpa [#allocation3], 1 }
  0x1f   :  { %62 = vsyncpa [#allocation4], 1 }

</bundles_post_ra>
